<compile_context>
chip_gen: v7x
topology: tpu7x:2x2x1
jax: 0.10.0
libtpu: 0.0.40
codegen_flags: <defaults>
</compile_context>

<pallas_src>
import functools

import jax
import jax.numpy as jnp
import numpy as np
from jax.experimental import pallas as pl
from jax.experimental.pallas import tpu as pltpu


def _round_up(x, m):
    return ((x + m - 1) // m) * m


def _vmem_capacity_bytes():
    """Per-core VMEM capacity; conservative (v7x-sized) fallback."""
    try:
        info = pltpu.get_tpu_info()
        cap = getattr(info, "vmem_capacity_bytes", None)
        if cap:
            return int(cap)
    except Exception:
        pass
    return 64 << 20  # smallest per-TensorCore VMEM across v5e/v6e/v7x


def _adaptive_concat_pool_kernel(x_ref, out_ref, max_acc, sum_acc, *,
                                 inv_hw, hw_total, thw, mask_tail):
    """One grid step: reduce a (tb, tc, thw) slab into running max/sum.

    Grid = (batch tiles, channel tiles, spatial tiles); spatial is the
    reduction axis (last, "arbitrary").  Output block is resident across the
    spatial axis and written once at the final spatial step.
    """
    hwi = pl.program_id(2)

    @pl.when(hwi == 0)
    def _init():
        max_acc[...] = jnp.full_like(max_acc, -jnp.inf)
        sum_acc[...] = jnp.zeros_like(sum_acc)

    x = x_ref[...].astype(jnp.float32)           # (tb, tc, thw)
    if mask_tail:
        # Last spatial block may extend past H*W; its out-of-bounds lanes hold
        # unspecified VMEM contents, so mask them out of both reductions.
        pos = hwi * thw + jax.lax.broadcasted_iota(jnp.int32, x.shape, 2)
        valid = pos < hw_total
        x_for_max = jnp.where(valid, x, -jnp.inf)
        x_for_sum = jnp.where(valid, x, 0.0)
    else:
        x_for_max = x
        x_for_sum = x

    max_acc[...] = jnp.maximum(max_acc[...], jnp.max(x_for_max, axis=-1))
    sum_acc[...] = sum_acc[...] + jnp.sum(x_for_sum, axis=-1)

    @pl.when(hwi == pl.num_programs(2) - 1)
    def _finalize():
        out_ref[:, 0:1, :] = max_acc[...][:, None, :].astype(out_ref.dtype)
        out_ref[:, 1:2, :] = (sum_acc[...] * inv_hw)[:, None, :].astype(
            out_ref.dtype)


def _choose_tiles(n, c, hw, itemsize, budget_bytes):
    """Pick (tb, tc, thw) with padding-aware VMEM accounting.

    Invariants:
      * tb divides n and tc divides c exactly (no padded rows on the
        parallel axes ever reach the reductions);
      * tc == c or tc % 128 == 0 (output-block lane constraint);
      * thw == hw or thw % 128 == 0 (input-block lane constraint); a ragged
        last spatial block is masked inside the kernel.
    """
    sub = max(8, 32 // itemsize)          # sublane multiple for this dtype
    hw_pad = _round_up(hw, 128)           # lane padding of the spatial axis

    # --- channel tile: keep full C unless one channel row blows the budget
    tc = c
    if _round_up(c, sub) * hw_pad * itemsize > budget_bytes and c % 128 == 0:
        t = max(128, (budget_bytes // (hw_pad * itemsize)) // 128 * 128)
        t = min(t, c)
        while t > 128 and c % t != 0:
            t -= 128
        if c % t == 0:
            tc = t
    tc_pad = tc if tc % sub == 0 else _round_up(tc, sub)

    # --- spatial (reduction) tile: split H*W when a full-C row is too big
    thw = hw
    if tc_pad * hw_pad * itemsize > budget_bytes:
        t = (budget_bytes // (tc_pad * itemsize)) // 128 * 128
        thw = max(128, t)
        if thw >= hw:
            thw = hw
    thw_pad = thw if thw % 128 == 0 else _round_up(thw, 128)

    # --- batch tile: pack rows up to the (padded) budget; must divide N
    block_row_bytes = max(1, tc_pad * thw_pad * itemsize)
    tb = max(1, min(n, budget_bytes // block_row_bytes))
    while n % tb != 0:
        tb -= 1

    # --- megacore: ensure the *parallel* axes have a few steps (v7x: 2 TCs)
    target_steps = 4
    while (n // tb) * (c // tc) < target_steps:
        if tb > 1:
            tb -= 1
            while n % tb != 0:
                tb -= 1
        elif tc % 256 == 0:               # halving keeps tc % 128 == 0, tc | c
            tc //= 2
        else:
            break

    return tb, tc, thw


def adaptive_concat_pool2d(x, sz=None, *, budget_bytes=None):
    """Pallas TPU equivalent of AdaptiveConcatPool2d.

    Args:
      x: (N, C, H, W) array (NCHW, as in PyTorch).
      sz: adaptive output size; only the default (None -> 1) is supported.
      budget_bytes: optional per-block VMEM budget override (testing).

    Returns:
      (N, 2*C, 1, 1) array: [maxpool, avgpool] concatenated along channels.
    """
    output_size = sz or 1
    if output_size != 1:
        # TODO(synk): general adaptive pooling bins (sz > 1) not implemented.
        raise NotImplementedError("only output_size=1 (default) is supported")

    n, c, h, w = x.shape
    hw = h * w
    x3 = x.reshape(n, c, hw)  # free reshape for contiguous NCHW
    itemsize = jnp.dtype(x.dtype).itemsize
    sub = max(8, 32 // itemsize)

    # Generation-aware VMEM cap (v7x: 64 MiB/TC -> ~48 MiB usable).
    cap = max(24 << 20, _vmem_capacity_bytes() - (16 << 20))
    if budget_bytes is None:
        budget_bytes = int(min(12 << 20, max(2 << 20, (cap - (8 << 20)) // 3)))

    tb, tc, thw = _choose_tiles(n, c, hw, itemsize, budget_bytes)
    nhw = pl.cdiv(hw, thw)
    mask_tail = (hw % thw) != 0

    # Honest (padded) VMEM footprint: double-buffered in/out + scratch.
    tc_pad = tc if tc % sub == 0 else _round_up(tc, sub)
    thw_pad = thw if thw % 128 == 0 else _round_up(thw, 128)
    in_block = tb * tc_pad * thw_pad * itemsize
    out_block = tb * sub * _round_up(tc, 128) * itemsize
    scratch_bytes = 2 * _round_up(tb, 8) * _round_up(tc, 128) * 4
    needed = 2 * in_block + 2 * out_block + scratch_bytes + (2 << 20)
    vmem_limit = int(min(max(needed, 32 << 20), cap))

    kernel = functools.partial(
        _adaptive_concat_pool_kernel,
        inv_hw=1.0 / float(hw), hw_total=hw, thw=thw, mask_tail=mask_tail)

    out = pl.pallas_call(
        kernel,
        out_shape=jax.ShapeDtypeStruct((n, 2, c), x.dtype),
        grid=(n // tb, c // tc, nhw),
        in_specs=[pl.BlockSpec((tb, tc, thw), lambda b, ci, hwi: (b, ci, hwi))],
        out_specs=pl.BlockSpec((tb, 2, tc), lambda b, ci, hwi: (b, 0, ci)),
        scratch_shapes=[pltpu.VMEM((tb, tc), jnp.float32),
                        pltpu.VMEM((tb, tc), jnp.float32)],
        compiler_params=pltpu.CompilerParams(
            dimension_semantics=("parallel", "parallel", "arbitrary"),
            vmem_limit_bytes=vmem_limit),
    )(x3)

    # (N, 2, C) -> (N, 2*C, 1, 1): row-major flatten gives
    # [max_0..max_{C-1}, avg_0..avg_{C-1}] == torch.cat([mp(x), ap(x)], 1).
    return out.reshape(n, 2 * c, 1, 1)


def _reference(x):
    return jnp.concatenate(
        [jnp.max(x, axis=(2, 3), keepdims=True),
         jnp.mean(x, axis=(2, 3), keepdims=True)], axis=1)


if __name__ == "__main__":
    key = jax.random.PRNGKey(0)

    # 1) Small shape consistent with the module's forward (NCHW).
    x = jax.random.normal(key, (2, 4, 16, 16), dtype=jnp.float32)
    out = jax.block_until_ready(adaptive_concat_pool2d(x))
    assert out.shape == (2, 8, 1, 1), out.shape
    np.testing.assert_allclose(np.asarray(out), np.asarray(_reference(x)),
                               rtol=1e-5, atol=1e-5)

    # 2) ResNet-head-like: non-128-multiple spatial size, odd batch.
    x2 = jax.random.normal(jax.random.PRNGKey(1), (3, 8, 7, 7),
                           dtype=jnp.float32)
    out2 = jax.block_until_ready(adaptive_concat_pool2d(x2))
    assert out2.shape == (3, 16, 1, 1), out2.shape
    np.testing.assert_allclose(np.asarray(out2), np.asarray(_reference(x2)),
                               rtol=1e-5, atol=1e-5)

    # 3) Force the spatial reduction grid axis (with a ragged, masked tail)
    #    using a tiny budget override, at a small shape.
    x3 = jax.random.normal(jax.random.PRNGKey(2), (2, 8, 40, 40),
                           dtype=jnp.float32)
    out3 = jax.block_until_ready(
        adaptive_concat_pool2d(x3, budget_bytes=32 << 10))
    assert out3.shape == (2, 16, 1, 1), out3.shape
    np.testing.assert_allclose(np.asarray(out3), np.asarray(_reference(x3)),
                               rtol=1e-5, atol=1e-5)

    # 4) Force the channel-split (128-multiple) path at a small shape.
    x4 = jax.random.normal(jax.random.PRNGKey(3), (1, 256, 8, 8),
                           dtype=jnp.float32)
    out4 = jax.block_until_ready(
        adaptive_concat_pool2d(x4, budget_bytes=64 << 10))
    assert out4.shape == (1, 512, 1, 1), out4.shape
    np.testing.assert_allclose(np.asarray(out4), np.asarray(_reference(x4)),
                               rtol=1e-5, atol=1e-5)

    print("KERNEL_OK")
</pallas_src>

<mosaic_0001>
module attributes {stable_mosaic.version = 11 : i64} {
  func.func @_adaptive_concat_pool_kernel(%arg0: i32, %arg1: i32, %arg2: i32, %arg3: memref<1x4x256xf32, #tpu.memory_space<vmem>>, %arg4: memref<1x2x4xf32, #tpu.memory_space<vmem>>, %arg5: memref<1x4xf32, #tpu.memory_space<vmem>>, %arg6: memref<1x4xf32, #tpu.memory_space<vmem>>) attributes {dimension_semantics = [#tpu.dimension_semantics<parallel>, #tpu.dimension_semantics<parallel>, #tpu.dimension_semantics<arbitrary>], iteration_bounds = array<i64: 2, 1, 1>, scalar_prefetch = 0 : i64, scratch_operands = 2 : i64, tpu.core_type = #tpu.core_type<tc>, window_params = [{transform_indices = @transform_0, window_bounds = array<i64: 1, 4, 256>}, {transform_indices = @transform_1, window_bounds = array<i64: 1, 2, 4>}]} {
    %c0_i32 = arith.constant 0 : i32
    %0 = arith.cmpi eq, %arg2, %c0_i32 : i32
    %1 = arith.extui %0 : i1 to i32
    %c0_i32_0 = arith.constant 0 : i32
    %2 = arith.cmpi ne, %1, %c0_i32_0 : i32
    scf.if %2 {
      %cst_14 = arith.constant 0xFF800000 : f32
      %15 = vector.broadcast %cst_14 : f32 to vector<1x4xf32>
      %c0_15 = arith.constant 0 : index
      %c0_16 = arith.constant 0 : index
      %16 = vector.load %arg5[%c0_15, %c0_16] : memref<1x4xf32, #tpu.memory_space<vmem>>, vector<1x4xf32>
      tpu.vector_store %arg5[%c0_15, %c0_16], %15 {strides = array<i32>} : memref<1x4xf32, #tpu.memory_space<vmem>>, vector<1x4xf32>,
      %cst_17 = arith.constant 0.000000e+00 : f32
      %17 = vector.broadcast %cst_17 : f32 to vector<1x4xf32>
      %c0_18 = arith.constant 0 : index
      %c0_19 = arith.constant 0 : index
      %18 = vector.load %arg6[%c0_18, %c0_19] : memref<1x4xf32, #tpu.memory_space<vmem>>, vector<1x4xf32>
      tpu.vector_store %arg6[%c0_18, %c0_19], %17 {strides = array<i32>} : memref<1x4xf32, #tpu.memory_space<vmem>>, vector<1x4xf32>,
    } else {
    }
    %c0 = arith.constant 0 : index
    %c0_1 = arith.constant 0 : index
    %c0_2 = arith.constant 0 : index
    %3 = vector.load %arg3[%c0, %c0_1, %c0_2] : memref<1x4x256xf32, #tpu.memory_space<vmem>>, vector<1x4x256xf32>
    %c0_3 = arith.constant 0 : index
    %c0_4 = arith.constant 0 : index
    %4 = vector.load %arg5[%c0_3, %c0_4] : memref<1x4xf32, #tpu.memory_space<vmem>>, vector<1x4xf32>
    %cst = arith.constant dense<0xFF800000> : vector<1x4xf32>
    %5 = vector.multi_reduction <maximumf>, %3, %cst [2] : vector<1x4x256xf32> to vector<1x4xf32>
    %6 = arith.maximumf %4, %5 : vector<1x4xf32>
    %c0_5 = arith.constant 0 : index
    %c0_6 = arith.constant 0 : index
    %7 = vector.load %arg5[%c0_5, %c0_6] : memref<1x4xf32, #tpu.memory_space<vmem>>, vector<1x4xf32>
    tpu.vector_store %arg5[%c0_5, %c0_6], %6 {strides = array<i32>} : memref<1x4xf32, #tpu.memory_space<vmem>>, vector<1x4xf32>,
    %c0_7 = arith.constant 0 : index
    %c0_8 = arith.constant 0 : index
    %8 = vector.load %arg6[%c0_7, %c0_8] : memref<1x4xf32, #tpu.memory_space<vmem>>, vector<1x4xf32>
    %cst_9 = arith.constant dense<0.000000e+00> : vector<1x4xf32>
    %9 = vector.multi_reduction <add>, %3, %cst_9 [2] : vector<1x4x256xf32> to vector<1x4xf32>
    %10 = arith.addf %8, %9 : vector<1x4xf32>
    %c0_10 = arith.constant 0 : index
    %c0_11 = arith.constant 0 : index
    %11 = vector.load %arg6[%c0_10, %c0_11] : memref<1x4xf32, #tpu.memory_space<vmem>>, vector<1x4xf32>
    tpu.vector_store %arg6[%c0_10, %c0_11], %10 {strides = array<i32>} : memref<1x4xf32, #tpu.memory_space<vmem>>, vector<1x4xf32>,
    %c0_i32_12 = arith.constant 0 : i32
    %12 = arith.cmpi eq, %arg2, %c0_i32_12 : i32
    %13 = arith.extui %12 : i1 to i32
    %c0_i32_13 = arith.constant 0 : i32
    %14 = arith.cmpi ne, %13, %c0_i32_13 : i32
    scf.if %14 {
      %c0_14 = arith.constant 0 : index
      %c0_15 = arith.constant 0 : index
      %15 = vector.load %arg5[%c0_14, %c0_15] : memref<1x4xf32, #tpu.memory_space<vmem>>, vector<1x4xf32>
      %16 = vector.shape_cast %15 : vector<1x4xf32> to vector<1x1x4xf32>
      %c0_16 = arith.constant 0 : index
      %c0_17 = arith.constant 0 : index
      %c0_18 = arith.constant 0 : index
      %17 = vector.load %arg4[%c0_16, %c0_17, %c0_18] : memref<1x2x4xf32, #tpu.memory_space<vmem>>, vector<1x1x4xf32>
      tpu.vector_store %arg4[%c0_16, %c0_17, %c0_18], %16 {strides = array<i32>} : memref<1x2x4xf32, #tpu.memory_space<vmem>>, vector<1x1x4xf32>,
      %c0_19 = arith.constant 0 : index
      %c0_20 = arith.constant 0 : index
      %18 = vector.load %arg6[%c0_19, %c0_20] : memref<1x4xf32, #tpu.memory_space<vmem>>, vector<1x4xf32>
      %cst_21 = arith.constant 3.906250e-03 : f32
      %19 = vector.broadcast %cst_21 : f32 to vector<1x4xf32>
      %20 = arith.mulf %18, %19 : vector<1x4xf32>
      %21 = vector.shape_cast %20 : vector<1x4xf32> to vector<1x1x4xf32>
      %c0_22 = arith.constant 0 : index
      %c1 = arith.constant 1 : index
      %c0_23 = arith.constant 0 : index
      %22 = vector.load %arg4[%c0_22, %c1, %c0_23] : memref<1x2x4xf32, #tpu.memory_space<vmem>>, vector<1x1x4xf32>
      tpu.vector_store %arg4[%c0_22, %c1, %c0_23], %21 {strides = array<i32>} : memref<1x2x4xf32, #tpu.memory_space<vmem>>, vector<1x1x4xf32>,
    } else {
    }
    return
  }
  func.func @transform_0(%arg0: i32, %arg1: i32, %arg2: i32) -> (i32, i32, i32) {
    %c0_i32 = arith.constant 0 : i32
    return %arg0, %arg1, %arg2 : i32, i32, i32
  }
  func.func @transform_1(%arg0: i32, %arg1: i32, %arg2: i32) -> (i32, i32, i32) {
    %c0_i32 = arith.constant 0 : i32
    %c0_i32_0 = arith.constant 0 : i32
    return %arg0, %c0_i32, %arg1 : i32, i32, i32
  }
}

</mosaic_0001>

<bundles_post_ra>
// kernel: tpu_custom_call.1
= control target key start
LH: loop header
LB: loop body
LE: loop exit
PB: predicated region body
PF: predicated region fallthrough
CT: control target
= control target key end

     0   :  { %6 = vsyncpa [#allocation5], 0  ;;  %s823_s0 = inlined_call_operand.hbm [shape: f32[2,4,256], index: 0, kind: input, shape index: {}]   ;;  %s824_s1 = inlined_call_operand.hbm [shape: f32[2,2,4], index: 1, kind: output, shape index: {}]  }
   0x1   :  { %8 = vsyncpa [#allocation5 + $0x1], 0 }
   0x2   :  { %9 = vsyncpa [#allocation6], 0 }
   0x3   :  { %11 = vsyncpa [#allocation6 + $0x1], 0  ;;  %s644_s6 = smov 0   ;;  %s646_s7 = smov 0  }
   0x4   :  { %s648_s8 = smov 0   ;;  %s650_s9 = smov 0  }
   0x5   :  { %s652_s10 = smov 0   ;;  %s654_s11 = smov 0  }
   0x6 LB: > { %s430_s12 = sadd.s32 4294967295, %s626_s11   ;;  %s431_s13 = sadd.s32 4294967294, %s626_s11   ;;  %s626_s11 = sphi %s654_s11, %s17_s11   ;;  %s622_s10 = sphi %s652_s10, %s840_s10   ;;  %s618_s9 = sphi %s650_s9, %s839_s9   ;;  %s614_s8 = sphi %s648_s8, %s838_s8   ;;  %s610_s7 = sphi %s646_s7, %s837_s7   ;;  %s606_s6 = sphi %s644_s6, %s836_s6  }
   0x7   : > { %s36_s14 = sadd.s32 1, %s622_s10  ;;  %s47_s15 = sadd.s32 1, %s614_s8 }
   0x8   : > { %p38_p0 = scmp.ge.s32.totalorder %s36_s14, 2  ;;  %p54_p1 = scmp.ne.s32.totalorder %s614_s8, %s610_s7 }
   0x9   : > { %p55_p2 = scmp.eq.s32.totalorder %s626_s11, 0  ;;  %p60_p3 = scmp.ne.s32.totalorder %s610_s7, %s606_s6 }
   0xa   : > { %s842_s14 = smov (%p38_p0, %s36_s14), 0  ;;  %p61_p5 = scmp.eq.s32.totalorder %s430_s12, 0 }
   0xb   : > { %p685_p4 = por %p55_p2, %p54_p1  ;;  %s40_s17 = ssub.s32 %s622_s10, %s842_s14 }
   0xc   : > { %p86_p6 = scmp.eq.s32.totalorder %s430_s12, 1  ;;  %p45_p7 = scmp.eq.s32.totalorder %s40_s17, 0 }
   0xd   : > { %p691_p8 = por %p61_p5, %p60_p3  ;;  %p92_p10 = scmp.eq.s32.totalorder %s431_s13, 1 }
   0xe   : > { %p695_p9 = por %p86_p6, %p54_p1  ;;  %p457_p13 = scmp.lt.s32.totalorder %s626_s11, 2 }
   0xf   : > { %s700_s20 = scalar_select %p45_p7, %s614_s8, %s47_s15  }
  0x10   : > { %s828_s19 = scalar_select %p695_p9, 1, 0 }
  0x11   : > { %p702_p11 = por %p92_p10, %p60_p3  ;;  %s112_s22 = sand.u32 1, %s614_s8  }
  0x12   : > { %s434_s23 = sshll.u32 %s112_s22, 3  ;;  %s444_s24 = sshll.u32 %s622_s10, 7 }
  0x13   : > { %s829_s21 = scalar_select %p702_p11, 1, 0 }
  0x14   : > { %s713_s27 = scalar_lea.hbm %s823_s0, %s444_s24  ;;  %s116_s28 = scalar_lea.vmem [#allocation4], %s434_s23 }
  0x15   : > { %s128_s29 = sshll.u32 %s116_s28, 4  ;;  %p719_p0 = pnand %p457_p13, %p685_p4  ;;  %s715_s29 = int_to_ptr.vmem [resolvable:$true] %s128_s29 }
  0x16   : > { %s113_s2 = scalar_lea.sflag [#allocation5], %s112_s22  ;;  %s514_s3 = scalar_lea.hbm %s713_s27, 128 }
  0x17   : > { %p515_p3 = scmp.ne.s32.totalorder %s713_s27, %s514_s3  ;;  %p516_p5 = pneg %p719_p0 }
  0x18   : > { %s519_s12 = scalar_lea.hbm %s823_s0, 256  ;;  %p520_p4 = scmp.lt.u32.totalorder %s713_s27, %s823_s0 }
  0x19   : > { %p517_p6 = pnand %p516_p5, %p515_p3  ;;  %p521_p10 = scmp.lt.u32.totalorder %s519_s12, %s514_s3 }
  0x1a   : > { %p523_p12 = scmp.lt.u32.totalorder %s514_s3, %s713_s27 }
  0x1b   : > { %p518_p7 = pneg %p517_p6  ;;  %p522_p13 = por %p521_p10, %p520_p4 }
  0x1d   : > { %p524_p1 = por %p523_p12, %p522_p13 }
  0x1f   : > { %p525_p2 = pnand %p524_p1, %p518_p7 }
  0x21   : > { %528 = shalt.err (!%p525_p2)
}
  0x22   : > { %s529_s16 = scalar_lea.vmem %s715_s29, 128  ;;  %s628_s17 = smov [#allocation4]  }
  0x23   : > { %p530_p3 = scmp.ne.s32.totalorder %s715_s29, %s529_s16  ;;  %s534_s22 = sshll.u32 %s628_s17, 4  ;;  %s535_s22 = int_to_ptr.vmem [resolvable:$false] %s534_s22 }
  0x24   : > { %s536_s23 = scalar_lea.vmem %s535_s22, 256  ;;  %p537_p9 = scmp.lt.s32.totalorder %s715_s29, %s535_s22 }
  0x25   : > { %p532_p6 = pnand %p530_p3, %p516_p5  ;;  %p538_p4 = scmp.lt.s32.totalorder %s536_s23, %s529_s16 }
  0x27   : > { %p533_p11 = pneg %p532_p6  ;;  %p539_p10 = por %p538_p4, %p537_p9 }
  0x29   : > { %p540_p12 = pnand %p539_p10, %p533_p11 }
  0x2b   : > { %543 = shalt.err (!%p540_p12)
}
  0x2c   : > { %452 = dma.hbm_to_vmem [thread:$0]  (!%p719_p0), %s713_s27, 128, %s715_s29, %s113_s2  }
  0x2d   : > { %p831_p1 = scmp.lt.s32.totalorder %s626_s11, 3  ;;  %p832_p2 = scmp.ge.s32.totalorder %s626_s11, 1 }
  0x2f   : > { %p134_p5 = pnand %p832_p2, %p831_p1 }
  0x30   : > { %s755_s24 = sand.u32 (!%p134_p5), 1, %s610_s7  }
  0x31   : > { %137 = sbr.rel (%p134_p5) target bundleno = 378 (0x17a), region = 24  ;;  %s438_s25 = sshll.u32 (!%p134_p5), %s755_s24, 3 }
  0x32   : > { %s140_s26 = scalar_lea.sflag (!%p134_p5), [#allocation5], %s755_s24  ;;  %s143_s28 = scalar_lea.vmem (!%p134_p5), [#allocation4], %s438_s25 }
  0x38   : > { %597 = dma.done.wait (%p691_p8), %s140_s26, 128  }
  0x39   : > { %599 = vsyncadd (%p691_p8), %s140_s26, 4294967168  ;;  %vm175_vm0 = vcmask 1043456   ;;  %v170_v0 = vld [vmem:[%s143_s28] sm:$0xff]  ;;  %v629_v8 = vmov 0   ;;  %v182_v9 = vlaneseq  ;;  %vm167_vm1 = vcmask 24576   ;;  %s439_s18 = sshll.u32 %s755_s24, 1 }
  0x3a   : > { %v173_v1 = vcombine.high %v170_v0, %v170_v0  ;;  %v250_v2 = vsel %vm175_vm0, %v170_v0, 0.0  ;;  %v176_v4 = vsel %vm175_vm0, %v170_v0, -inf  ;;  %511 = vset.pattern.permute.xlu1 %v629_v8  ;;  %512 = vset.pattern.permute.xlu0 %v629_v8  ;;  %v630_v12 = vmov 0.0   ;;  %s441_s27 = sshll.u32 %s618_s9, 5  ;;  %s161_s29 = scalar_lea.vmem [#allocation7], %s439_s18 }
  0x3b   : > { %v183_v10 = vshrl.u32 %v182_v9, 7  ;;  %v226_v11 = vand.u32 127, %v182_v9  ;;  %169 = vst.msk [vmem:[#allocation3] sm:$0x1] %vm167_vm1, %v630_v12  ;;  %v631_v14 = vmov 1966171168   ;;  %s773_s4 = scalar_lea.hbm %s824_s1, %s441_s27 }
  0x3c   : > { %v251_v3 = vsel %vm175_vm0, %v173_v1, 0.0  ;;  %v177_v5 = vsel %vm175_vm0, %v173_v1, -inf  ;;  %v201_v15 = vunpack.c.l.s4 %v631_v14  ;;  %v632_v44 = vmov -inf   ;;  %s343_s30 = sshll.u32 %s161_s29, 4  ;;  %s329_s5 = scalar_lea.sflag [#allocation6], %s755_s24  ;;  %s775_s30 = int_to_ptr.vmem [resolvable:$true] %s343_s30 }
  0x3d   : > { %v252_v6 = vadd.f32 %v251_v3, %v250_v2  ;;  %v178_v7 = vmax.f32 %v176_v4, %v177_v5  ;;  %v229_v13 = vsub.s32 %v226_v11, %v183_v10  ;;  %v184_v16 = vsub.s32 0, %v183_v10  ;;  %168 = vst.msk [vmem:[#allocation2] sm:$0x1] %vm167_vm1, %v632_v44  ;;  %s544_s9 = scalar_lea.vmem %s775_s30, 32  ;;  %p833_p9 = scmp.ne.s32.totalorder %s828_s19, 0 }
  0x3e   : > { %v188_v17 = vsub.s32 1, %v183_v10  ;;  %v192_v18 = vsub.s32 2, %v183_v10  ;;  %v196_v19 = vsub.s32 3, %v183_v10  ;;  %v202_v20 = vunpack.c.0.s8 %v201_v15  ;;  %p545_p8 = scmp.ne.s32.totalorder %s775_s30, %s544_s9  ;;  %s633_s12 = smov [#allocation7]  }
  0x3f   : > { %253 = vadd.xlane.f32.xlu0 %v252_v6  ;;  %s548_s13 = sshll.u32 %s633_s12, 4  ;;  %s549_s13 = int_to_ptr.vmem [resolvable:$false] %s548_s13 }
  0x40   : > { %v205_v26 = vsub.s32 %v202_v20, %v183_v10  ;;  %p546_p11 = pnand %p545_p8, %p833_p9  ;;  %s550_s15 = scalar_lea.vmem %s549_s13, 64 }
  0x41   : > { %p551_p7 = scmp.lt.s32.totalorder %s775_s30, %s549_s13  ;;  %p552_p13 = scmp.lt.s32.totalorder %s550_s15, %s544_s9 }
  0x42   : > { %v249_v48 = vld [vmem:[#allocation3] sm:$0x1]  ;;  %p547_p0 = pneg %p546_p11 }
  0x43   : > { %179 = vmax.xlane.f32.xlu0 %v178_v7  ;;  %p553_p3 = por %p552_p13, %p551_p7 }
  0x44   : > { %v171_v54 = vld [vmem:[#allocation2] sm:$0x1] }
  0x45   : > { %p554_p6 = pnand %p553_p3, %p547_p0 }
  0xcc   : > { %v254_v21 = vpop.xlane.xlu0 %253 }
  0xcd   : > { %v259_v22 = vrot.slane %v254_v21, %v184_v16  ;;  %v263_v23 = vrot.slane %v254_v21, %v188_v17  ;;  %v267_v24 = vrot.slane %v254_v21, %v192_v18  ;;  %v271_v25 = vrot.slane %v254_v21, %v196_v19 }
  0xcf   : > { %v272_v27 = vcombine.low %v259_v22, %v263_v23  ;;  %v273_v28 = vcombine.low %v267_v24, %v271_v25 }
  0xd0   : > { %v180_v29 = vpop.xlane.xlu0 %179 }
  0xd1   : > { %v185_v30 = vrot.slane %v180_v29, %v184_v16  ;;  %v189_v31 = vrot.slane %v180_v29, %v188_v17  ;;  %v193_v32 = vrot.slane %v180_v29, %v192_v18  ;;  %v197_v33 = vrot.slane %v180_v29, %v196_v19 }
  0xd2   : > { %v280_v34 = vrot.slane %v272_v27, %v205_v26  ;;  %v287_v35 = vrot.slane %v273_v28, %v205_v26 }
  0xd3   : > { %v198_v36 = vcombine.low %v185_v30, %v189_v31  ;;  %v199_v37 = vcombine.low %v193_v32, %v197_v33 }
  0xd4   : > { %v288_v38 = vcombine.low %v280_v34, %v287_v35 }
  0xd5   : > { %v206_v39 = vrot.slane %v198_v36, %v205_v26  ;;  %v213_v40 = vrot.slane %v199_v37, %v205_v26 }
  0xd6   : > { %v295_v41 = vrot.slane %v288_v38, %v205_v26 }
  0xd7   : > { %v214_v42 = vcombine.low %v206_v39, %v213_v40 }
  0xd8   : > { %297 = vperm.xlu1 %511, %v295_v41  }
  0xd9   : > { %v221_v43 = vrot.slane %v214_v42, %v205_v26 }
  0xdc   : > { %223 = vperm.xlu1 %511, %v221_v43  }
 0x157   : > { %v298_v45 = vpop.permute.xlu1 %297 }
 0x158   : > { %v302_v46 = vrot.slane %v298_v45, %v229_v13 }
 0x15a   : > { %v309_v47 = vrot.slane %v302_v46, %v205_v26 }
 0x15b   : > { %v224_v49 = vpop.permute.xlu1 %223 }
 0x15c   : > { %v316_v50 = vrot.slane %v309_v47, %v205_v26  ;;  %v230_v51 = vrot.slane %v224_v49, %v229_v13 }
 0x15e   : > { %v318_v52 = vadd.f32 %v316_v50, %v249_v48  ;;  %v237_v53 = vrot.slane %v230_v51, %v205_v26 }
 0x160   : > { %319 = vst.msk [vmem:[#allocation3] sm:$0x1] %vm167_vm1, %v318_v52  ;;  %v244_v55 = vrot.slane %v237_v53, %v205_v26 }
 0x162   : > { %v246_v56 = vmax.f32 %v171_v54, %v244_v55 }
 0x164   : > { %248 = vst.msk [vmem:[#allocation2] sm:$0x1] %vm167_vm1, %v246_v56 }
 0x167   : > { %v325_v57 = vld [vmem:[#allocation3] sm:$0x1] }
 0x168   : > { %v326_v58 = vmul.f32 0.00390625, %v325_v57 }
 0x16a   : > { %327 = vst.msk [vmem:[%s161_s29 + $0x1] sm:$0x1] %vm167_vm1, %v326_v58 }
 0x16b   : > { %v323_v59 = vld [vmem:[#allocation2] sm:$0x1] }
 0x16c   : > { %324 = vst.msk [vmem:[%s161_s29] sm:$0x1] %vm167_vm1, %v323_v59 }
 0x16d   : > { %557 = shalt.err (!%p554_p6)
}
 0x16e   : > { %s558_s16 = scalar_lea.hbm %s773_s4, 32  ;;  %s562_s23 = scalar_lea.hbm %s824_s1, 64 }
 0x16f   : > { %p559_p4 = scmp.ne.s32.totalorder %s773_s4, %s558_s16  ;;  %p563_p1 = scmp.lt.u32.totalorder %s773_s4, %s824_s1 }
 0x170   : > { %p564_p2 = scmp.lt.u32.totalorder %s562_s23, %s558_s16  ;;  %p566_p8 = scmp.lt.u32.totalorder %s558_s16, %s773_s4 }
 0x171   : > { %p560_p10 = pnand %p559_p4, %p833_p9 }
 0x172   : > { %p565_p5 = por %p564_p2, %p563_p1 }
 0x173   : > { %p561_p12 = pneg %p560_p10 }
 0x174   : > { %p567_p11 = por %p566_p8, %p565_p5 }
 0x176   : > { %p568_p0 = pnand %p567_p11, %p561_p12 }
 0x178   : > { %571 = shalt.err (!%p568_p0)
}
 0x179   : > { %447 = dma.vmem_to_hbm [thread:$0]  (%p833_p9), %s775_s30, 32, %s773_s4, %s329_s5  }
 0x17a PF: > { %s355_s26 = sand.u32 1, %s606_s6   ;;  %p834_p7 = scmp.ne.s32.totalorder %s829_s21, 0 }
 0x17b   : > { %p835_p13 = scmp.ge.s32.totalorder %s626_s11, 2  ;;  %s356_s28 = scalar_lea.sflag [#allocation6], %s355_s26 }
 0x17d   : > { %p454_p3 = pnand %p835_p13, %p834_p7 }
 0x17f   : > { %601 = dma.done.wait (!%p454_p3), %s356_s28, 32  }
 0x180   : > { %603 = vsyncadd (!%p454_p3), %s356_s28, 4294967264  ;;  %s17_s11 = sadd.s32 1, %s626_s11   ;;  %s836_s6 = smov %s610_s7 }
 0x181   : > { %p14_p6 = scmp.ge.s32.totalorder %s17_s11, 4   ;;  %s837_s7 = smov %s614_s8 }
 0x182   : > { %s838_s8 = smov %s700_s20  ;;  %s839_s9 = smov %s622_s10 }
 0x183   : > { %s840_s10 = smov %s842_s14  ;;  %16 = sbr.rel (!%p14_p6) target bundleno = 6 (0x6), region = 77 }
 0x18a   :  { %361 = vsyncpa [#allocation5], 1 }
 0x18b   :  { %363 = vsyncpa [#allocation5 + $0x1], 1 }
 0x18c   :  { %364 = vsyncpa [#allocation6], 1 }
 0x18d   :  { %366 = vsyncpa [#allocation6 + $0x1], 1 }

</bundles_post_ra>
